<compile_context>
chip_gen: v7x
topology: tpu7x:2x2x1
jax: 0.10.0
libtpu: 0.0.40
codegen_flags: <defaults>
</compile_context>

<pallas_src>
import functools

import jax
import jax.numpy as jnp
from jax.experimental import pallas as pl
from jax.experimental.pallas import tpu as pltpu


def _dwsep_kernel(x_ref, dw_ref, db_ref, pw_ref, pb_ref, o_ref, *, Wp, L):
    # x_ref : (Rin,  Lp)   Rin = NB*Cin; zero-padded images, spatial flattened
    # dw_ref: (Rin,  9)    depthwise 3x3 taps (kh-major), tiled over NB images
    # db_ref: (Rin,  1)    depthwise bias (tiled over NB)
    # pw_ref: (Rout, Rin)  block-diagonal pointwise weights (per-image blocks)
    # pb_ref: (Rout, 1)    pointwise bias (tiled over NB)
    # o_ref : (Rout, L)    flat output incl. junk border columns (wrapper drops)

    # --- depthwise 3x3 (VPU): 9 static lane-offset windowed loads, three
    #     independent partial sums (one per kernel row) for VALU ILP ----------
    partials = []
    for kh in range(3):
        p = None
        for kw in range(3):
            start = kh * Wp + kw                                  # static
            t = kh * 3 + kw
            tap = dw_ref[:, t:t + 1]                              # (Rin, 1)
            term = x_ref[:, start:start + L].astype(jnp.float32) * tap
            p = term if p is None else p + term
        partials.append(p)
    acc = (partials[0] + partials[1]) + (partials[2] + db_ref[...])

    # --- pointwise 1x1: one block-diagonal matmul on the idle MXU ------------
    out = jnp.dot(pw_ref[...], acc, preferred_element_type=jnp.float32)
    out = out + pb_ref[...]
    o_ref[...] = out.astype(o_ref.dtype)        # lane-dense, 128-multiple store


def depthwise_separable_conv(x_nchw, dw_w, dw_b, pw_w, pw_b):
    """Forward pass equivalent to DepthWiseConv(in_channel, out_channel).

    x_nchw : (N, Cin, H, W)
    dw_w   : (Cin, 1, 3, 3)    depth_conv.weight (groups=Cin)
    dw_b   : (Cin,)            depth_conv.bias
    pw_w   : (Cout, Cin, 1, 1) point_conv.weight
    pw_b   : (Cout,)           point_conv.bias
    returns: (N, Cout, H, W)
    """
    N, Cin, H, W = x_nchw.shape
    Cout = pw_w.shape[0]
    # Kernel assumes 3x3 / stride 1 / pad 1 depthwise + 1x1 pointwise.
    assert dw_w.shape == (Cin, 1, 3, 3) and dw_b.shape == (Cin,)
    assert pw_w.shape == (Cout, Cin, 1, 1) and pw_b.shape == (Cout,)

    # Flat row pitch: smallest Wp >= W+2 with H*Wp a multiple of 128 (unmasked
    # lane-dense stores, exact 128-lane tiling); fall back to W+2 otherwise.
    Wp = W + 2
    for cand in range(W + 2, W + 2 + 128):
        if (H * cand) % 128 == 0:
            Wp = cand
            break
    L = H * Wp                      # flat output length per image/channel
    Lp = (H + 3) * Wp               # flat padded input length (1 top, 2 bottom)

    # Batch split: 2-way only if each half still fills full 8-sublane tiles
    # (lets v7x's two TensorCores share the batch); else one fat step.
    if (N % 2 == 0) and ((N // 2) * Cin) % 8 == 0 and ((N // 2) * Cout) % 8 == 0:
        n_blocks = 2
    else:
        n_blocks = 1
    NB = N // n_blocks
    Rin, Rout = NB * Cin, NB * Cout

    # Zero-pad (1 top, 2 bottom, 1 left, Wp-W-1 right); flatten spatial dims
    # and fuse batch into the sublane axis.  All metadata-only, no transposes.
    x_pad = jnp.pad(x_nchw, ((0, 0), (0, 0), (1, 2), (1, Wp - W - 1)))
    x_flat = x_pad.reshape(N * Cin, Lp)

    dw_k = jnp.tile(dw_w[:, 0, :, :].reshape(Cin, 9), (NB, 1))          # (Rin, 9)
    db_k = jnp.tile(dw_b.reshape(Cin, 1), (NB, 1))                      # (Rin, 1)
    pw_blk = jnp.kron(jnp.eye(NB, dtype=pw_w.dtype), pw_w[:, :, 0, 0])  # (Rout, Rin)
    pb_k = jnp.tile(pw_b.reshape(Cout, 1), (NB, 1))                     # (Rout, 1)

    kernel = functools.partial(_dwsep_kernel, Wp=Wp, L=L)
    out_flat = pl.pallas_call(
        kernel,
        out_shape=jax.ShapeDtypeStruct((N * Cout, L), x_nchw.dtype),
        grid=(n_blocks,),
        in_specs=[
            pl.BlockSpec((Rin, Lp), lambda b: (b, 0)),
            pl.BlockSpec((Rin, 9), lambda b: (0, 0)),
            pl.BlockSpec((Rin, 1), lambda b: (0, 0)),
            pl.BlockSpec((Rout, Rin), lambda b: (0, 0)),
            pl.BlockSpec((Rout, 1), lambda b: (0, 0)),
        ],
        out_specs=pl.BlockSpec((Rout, L), lambda b: (b, 0)),
        compiler_params=pltpu.CompilerParams(
            dimension_semantics=("parallel",)),
    )(x_flat, dw_k, db_k, pw_blk, pb_k)

    # INVARIANT: flat output has Wp-W junk columns per row; drop them here.
    return out_flat.reshape(N, Cout, H, Wp)[:, :, :, :W]


if __name__ == "__main__":
    key = jax.random.PRNGKey(0)
    k_x, k_dw, k_db, k_pw, k_pb = jax.random.split(key, 5)

    N, Cin, Cout, H, W = 2, 4, 8, 16, 16

    x = jax.random.normal(k_x, (N, Cin, H, W), dtype=jnp.float32)
    dw_w = jax.random.normal(k_dw, (Cin, 1, 3, 3), dtype=jnp.float32) * 0.1
    dw_b = jax.random.normal(k_db, (Cin,), dtype=jnp.float32) * 0.1
    pw_w = jax.random.normal(k_pw, (Cout, Cin, 1, 1), dtype=jnp.float32) * 0.1
    pw_b = jax.random.normal(k_pb, (Cout,), dtype=jnp.float32) * 0.1

    out = depthwise_separable_conv(x, dw_w, dw_b, pw_w, pw_b)
    out = jax.block_until_ready(out)

    # Reference with XLA convs (same semantics as the PyTorch module).
    ref_dw = jax.lax.conv_general_dilated(
        x, dw_w, window_strides=(1, 1), padding=((1, 1), (1, 1)),
        dimension_numbers=("NCHW", "OIHW", "NCHW"),
        feature_group_count=Cin) + dw_b.reshape(1, Cin, 1, 1)
    ref = jax.lax.conv_general_dilated(
        ref_dw, pw_w, window_strides=(1, 1), padding=((0, 0), (0, 0)),
        dimension_numbers=("NCHW", "OIHW", "NCHW")) + pw_b.reshape(1, Cout, 1, 1)

    assert out.shape == (N, Cout, H, W)
    assert jnp.allclose(out, ref, atol=1e-4, rtol=1e-4)
    print("KERNEL_OK")
</pallas_src>

<mosaic_0001>
module attributes {stable_mosaic.version = 11 : i64} {
  func.func @_dwsep_kernel(%arg0: i32, %arg1: memref<8x456xf32, #tpu.memory_space<vmem>>, %arg2: memref<8x9xf32, #tpu.memory_space<vmem>>, %arg3: memref<8x1xf32, #tpu.memory_space<vmem>>, %arg4: memref<16x8xf32, #tpu.memory_space<vmem>>, %arg5: memref<16x1xf32, #tpu.memory_space<vmem>>, %arg6: memref<16x384xf32, #tpu.memory_space<vmem>>) attributes {dimension_semantics = [#tpu.dimension_semantics<parallel>], iteration_bounds = array<i64: 1>, scalar_prefetch = 0 : i64, scratch_operands = 0 : i64, tpu.core_type = #tpu.core_type<tc>, window_params = [{transform_indices = @transform_0, window_bounds = array<i64: 8, 456>}, {pipeline_mode = #tpu.pipeline_mode<synchronous>, transform_indices = @transform_1, window_bounds = array<i64: 8, 9>}, {pipeline_mode = #tpu.pipeline_mode<synchronous>, transform_indices = @transform_2, window_bounds = array<i64: 8, 1>}, {pipeline_mode = #tpu.pipeline_mode<synchronous>, transform_indices = @transform_3, window_bounds = array<i64: 16, 8>}, {pipeline_mode = #tpu.pipeline_mode<synchronous>, transform_indices = @transform_4, window_bounds = array<i64: 16, 1>}, {transform_indices = @transform_5, window_bounds = array<i64: 16, 384>}]} {
    %c0 = arith.constant 0 : index
    %c0_0 = arith.constant 0 : index
    %0 = vector.load %arg2[%c0, %c0_0] : memref<8x9xf32, #tpu.memory_space<vmem>>, vector<8x1xf32>
    %c0_1 = arith.constant 0 : index
    %c0_2 = arith.constant 0 : index
    %1 = vector.load %arg1[%c0_1, %c0_2] : memref<8x456xf32, #tpu.memory_space<vmem>>, vector<8x384xf32>
    %2 = vector.broadcast %0 : vector<8x1xf32> to vector<8x384xf32>
    %3 = arith.mulf %1, %2 : vector<8x384xf32>
    %c0_3 = arith.constant 0 : index
    %c1 = arith.constant 1 : index
    %4 = vector.load %arg2[%c0_3, %c1] : memref<8x9xf32, #tpu.memory_space<vmem>>, vector<8x1xf32>
    %c0_4 = arith.constant 0 : index
    %c1_5 = arith.constant 1 : index
    %5 = vector.load %arg1[%c0_4, %c1_5] : memref<8x456xf32, #tpu.memory_space<vmem>>, vector<8x384xf32>
    %6 = vector.broadcast %4 : vector<8x1xf32> to vector<8x384xf32>
    %7 = arith.mulf %5, %6 : vector<8x384xf32>
    %8 = arith.addf %3, %7 : vector<8x384xf32>
    %c0_6 = arith.constant 0 : index
    %c2 = arith.constant 2 : index
    %9 = vector.load %arg2[%c0_6, %c2] : memref<8x9xf32, #tpu.memory_space<vmem>>, vector<8x1xf32>
    %c0_7 = arith.constant 0 : index
    %c2_8 = arith.constant 2 : index
    %10 = vector.load %arg1[%c0_7, %c2_8] : memref<8x456xf32, #tpu.memory_space<vmem>>, vector<8x384xf32>
    %11 = vector.broadcast %9 : vector<8x1xf32> to vector<8x384xf32>
    %12 = arith.mulf %10, %11 : vector<8x384xf32>
    %13 = arith.addf %8, %12 : vector<8x384xf32>
    %c0_9 = arith.constant 0 : index
    %c3 = arith.constant 3 : index
    %14 = vector.load %arg2[%c0_9, %c3] : memref<8x9xf32, #tpu.memory_space<vmem>>, vector<8x1xf32>
    %c0_10 = arith.constant 0 : index
    %c24 = arith.constant 24 : index
    %15 = vector.load %arg1[%c0_10, %c24] : memref<8x456xf32, #tpu.memory_space<vmem>>, vector<8x384xf32>
    %16 = vector.broadcast %14 : vector<8x1xf32> to vector<8x384xf32>
    %17 = arith.mulf %15, %16 : vector<8x384xf32>
    %c0_11 = arith.constant 0 : index
    %c4 = arith.constant 4 : index
    %18 = vector.load %arg2[%c0_11, %c4] : memref<8x9xf32, #tpu.memory_space<vmem>>, vector<8x1xf32>
    %c0_12 = arith.constant 0 : index
    %c25 = arith.constant 25 : index
    %19 = vector.load %arg1[%c0_12, %c25] : memref<8x456xf32, #tpu.memory_space<vmem>>, vector<8x384xf32>
    %20 = vector.broadcast %18 : vector<8x1xf32> to vector<8x384xf32>
    %21 = arith.mulf %19, %20 : vector<8x384xf32>
    %22 = arith.addf %17, %21 : vector<8x384xf32>
    %c0_13 = arith.constant 0 : index
    %c5 = arith.constant 5 : index
    %23 = vector.load %arg2[%c0_13, %c5] : memref<8x9xf32, #tpu.memory_space<vmem>>, vector<8x1xf32>
    %c0_14 = arith.constant 0 : index
    %c26 = arith.constant 26 : index
    %24 = vector.load %arg1[%c0_14, %c26] : memref<8x456xf32, #tpu.memory_space<vmem>>, vector<8x384xf32>
    %25 = vector.broadcast %23 : vector<8x1xf32> to vector<8x384xf32>
    %26 = arith.mulf %24, %25 : vector<8x384xf32>
    %27 = arith.addf %22, %26 : vector<8x384xf32>
    %c0_15 = arith.constant 0 : index
    %c6 = arith.constant 6 : index
    %28 = vector.load %arg2[%c0_15, %c6] : memref<8x9xf32, #tpu.memory_space<vmem>>, vector<8x1xf32>
    %c0_16 = arith.constant 0 : index
    %c48 = arith.constant 48 : index
    %29 = vector.load %arg1[%c0_16, %c48] : memref<8x456xf32, #tpu.memory_space<vmem>>, vector<8x384xf32>
    %30 = vector.broadcast %28 : vector<8x1xf32> to vector<8x384xf32>
    %31 = arith.mulf %29, %30 : vector<8x384xf32>
    %c0_17 = arith.constant 0 : index
    %c7 = arith.constant 7 : index
    %32 = vector.load %arg2[%c0_17, %c7] : memref<8x9xf32, #tpu.memory_space<vmem>>, vector<8x1xf32>
    %c0_18 = arith.constant 0 : index
    %c49 = arith.constant 49 : index
    %33 = vector.load %arg1[%c0_18, %c49] : memref<8x456xf32, #tpu.memory_space<vmem>>, vector<8x384xf32>
    %34 = vector.broadcast %32 : vector<8x1xf32> to vector<8x384xf32>
    %35 = arith.mulf %33, %34 : vector<8x384xf32>
    %36 = arith.addf %31, %35 : vector<8x384xf32>
    %c0_19 = arith.constant 0 : index
    %c8 = arith.constant 8 : index
    %37 = vector.load %arg2[%c0_19, %c8] : memref<8x9xf32, #tpu.memory_space<vmem>>, vector<8x1xf32>
    %c0_20 = arith.constant 0 : index
    %c50 = arith.constant 50 : index
    %38 = vector.load %arg1[%c0_20, %c50] : memref<8x456xf32, #tpu.memory_space<vmem>>, vector<8x384xf32>
    %39 = vector.broadcast %37 : vector<8x1xf32> to vector<8x384xf32>
    %40 = arith.mulf %38, %39 : vector<8x384xf32>
    %41 = arith.addf %36, %40 : vector<8x384xf32>
    %42 = arith.addf %13, %27 : vector<8x384xf32>
    %c0_21 = arith.constant 0 : index
    %c0_22 = arith.constant 0 : index
    %43 = vector.load %arg3[%c0_21, %c0_22] : memref<8x1xf32, #tpu.memory_space<vmem>>, vector<8x1xf32>
    %44 = vector.broadcast %43 : vector<8x1xf32> to vector<8x384xf32>
    %45 = arith.addf %41, %44 : vector<8x384xf32>
    %46 = arith.addf %42, %45 : vector<8x384xf32>
    %c0_23 = arith.constant 0 : index
    %c0_24 = arith.constant 0 : index
    %47 = vector.load %arg4[%c0_23, %c0_24] : memref<16x8xf32, #tpu.memory_space<vmem>>, vector<16x8xf32>
    %cst = arith.constant dense<0.000000e+00> : vector<16x384xf32>
    %48 = tpu.matmul %47, %46, %cst {dimension_numbers = #tpu.dot_dimension_numbers<[1], [0], [0], [1], [0, 0, 1, 1], [], []>} : vector<16x8xf32>, vector<8x384xf32>, vector<16x384xf32> -> vector<16x384xf32>
    %c0_25 = arith.constant 0 : index
    %c0_26 = arith.constant 0 : index
    %49 = vector.load %arg5[%c0_25, %c0_26] : memref<16x1xf32, #tpu.memory_space<vmem>>, vector<16x1xf32>
    %50 = vector.broadcast %49 : vector<16x1xf32> to vector<16x384xf32>
    %51 = arith.addf %48, %50 : vector<16x384xf32>
    %c0_27 = arith.constant 0 : index
    %c0_28 = arith.constant 0 : index
    %52 = vector.load %arg6[%c0_27, %c0_28] : memref<16x384xf32, #tpu.memory_space<vmem>>, vector<16x384xf32>
    tpu.vector_store %arg6[%c0_27, %c0_28], %51 {strides = array<i32>} : memref<16x384xf32, #tpu.memory_space<vmem>>, vector<16x384xf32>,
    return
  }
  func.func @transform_0(%arg0: i32) -> (i32, i32) {
    %c0_i32 = arith.constant 0 : i32
    %c0_i32_0 = arith.constant 0 : i32
    return %arg0, %c0_i32 : i32, i32
  }
  func.func @transform_1(%arg0: i32) -> (i32, i32) {
    %c0_i32 = arith.constant 0 : i32
    %c0_i32_0 = arith.constant 0 : i32
    %c0_i32_1 = arith.constant 0 : i32
    return %c0_i32, %c0_i32_0 : i32, i32
  }
  func.func @transform_2(%arg0: i32) -> (i32, i32) {
    %c0_i32 = arith.constant 0 : i32
    %c0_i32_0 = arith.constant 0 : i32
    %c0_i32_1 = arith.constant 0 : i32
    return %c0_i32, %c0_i32_0 : i32, i32
  }
  func.func @transform_3(%arg0: i32) -> (i32, i32) {
    %c0_i32 = arith.constant 0 : i32
    %c0_i32_0 = arith.constant 0 : i32
    %c0_i32_1 = arith.constant 0 : i32
    return %c0_i32, %c0_i32_0 : i32, i32
  }
  func.func @transform_4(%arg0: i32) -> (i32, i32) {
    %c0_i32 = arith.constant 0 : i32
    %c0_i32_0 = arith.constant 0 : i32
    %c0_i32_1 = arith.constant 0 : i32
    return %c0_i32, %c0_i32_0 : i32, i32
  }
  func.func @transform_5(%arg0: i32) -> (i32, i32) {
    %c0_i32 = arith.constant 0 : i32
    %c0_i32_0 = arith.constant 0 : i32
    return %arg0, %c0_i32 : i32, i32
  }
}

</mosaic_0001>

<bundles_post_ra>
// kernel: tpu_custom_call.1
= control target key start
LH: loop header
LB: loop body
LE: loop exit
PB: predicated region body
PF: predicated region fallthrough
CT: control target
= control target key end

     0   :  { %v549_v1 = vmov 4   ;;  %v550_v2 = vmov 5   ;;  %s766_s0 = inlined_call_operand.vmem [shape: f32[8,456], index: 0, kind: input, shape index: {}]   ;;  %s767_s1 = inlined_call_operand.vmem [shape: f32[8,9], index: 1, kind: input, shape index: {}]   ;;  %s768_s2 = inlined_call_operand.vmem [shape: f32[8,1], index: 2, kind: input, shape index: {}]   ;;  %s769_s3 = inlined_call_operand.vmem [shape: f32[16,8], index: 3, kind: input, shape index: {}]   ;;  %s770_s4 = inlined_call_operand.vmem [shape: f32[16,1], index: 4, kind: input, shape index: {}]   ;;  %s771_s5 = inlined_call_operand.hbm [shape: f32[16,384], index: 5, kind: output, shape index: {}]  }
   0x1   :  { %v599_v0 = vld [vmem:[%s767_s1] sm:$0xff]  ;;  %515 = vset.pattern.permute.xlu0 %v549_v1  ;;  %517 = vset.pattern.permute.xlu1 %v550_v2 }
   0x2   :  { %106 = vperm.xlu0 %515, %v599_v0   ;;  %137 = vperm.xlu1 %517, %v599_v0  }
   0x3   :  { %10 = vsyncpa [#allocation3], 0  ;;  %v551_v3 = vmov 7   ;;  %v552_v4 = vmov 8   ;;  %v553_v5 = vmov 1   ;;  %v554_v6 = vmov 3  }
   0x4   :  { %v259_v7 = vld [vmem:[%s768_s2] sm:$0xff]  ;;  %v555_v8 = vmov 6   ;;  %v556_v9 = vmov 0   ;;  %v557_v10 = vmov 2   ;;  %v615_v11 = vld [vmem:[%s766_s0 + $0x18] sm:$0xff]  ;;  %v620_v12 = vld [vmem:[%s766_s0 + $0x8] sm:$0xff] }
   0x5   :  { %v627_v16 = vld [vmem:[%s766_s0 + $0x10] sm:$0xff]  ;;  %s558_s26 = smov 127   ;;  %v637_v22 = vld [vmem:[%s766_s0] sm:$0xff]  ;;  %s559_s0 = smov 126   ;;  %vm57_vm0 = vcmask 1039360   ;;  %vm87_vm1 = vcmask 1031168  }
   0x6   :  { %516 = vset.pattern.permute.xlu0 %v551_v3  ;;  %518 = vset.pattern.permute.xlu1 %v552_v4  ;;  %s560_s29 = smov 104   ;;  %vm305_vm2 = vcmask 64512   ;;  %s562_s7 = smov 80   ;;  %vm249_vm3 = vcmask 850944   ;;  %vm281_vm4 = vcmask 654336  }
   0x7   :  { %176 = vperm.xlu0 %516, %v599_v0   ;;  %207 = vperm.xlu1 %518, %v599_v0   ;;  %s563_s13 = smov [#allocation2]  }
   0x8   :  { %s475_s14 = sshll.u32 %s563_s13, 4  ;;  %s476_s14 = int_to_ptr.vmem [resolvable:$true] %s475_s14 }
   0x9   :  { %p530_p1 = scmp.lt.s32.totalorder %s476_s14, %s476_s14 }
   0xb   :  { %519 = vset.pattern.permute.xlu1 %v553_v5  ;;  %520 = vset.pattern.permute.xlu0 %v554_v6 }
   0xc   :  { %38 = vperm.xlu1 %519, %v599_v0   ;;  %98 = vperm.xlu0 %520, %v599_v0  }
  0x10   :  { %521 = vset.pattern.permute.xlu1 %v555_v8  ;;  %523 = vset.pattern.permute.xlu0 %v556_v9 }
  0x11   :  { %168 = vperm.xlu1 %521, %v599_v0   ;;  %262 = vperm.xlu0 %523, %v259_v7  }
  0x15   :  { %522 = vset.pattern.permute.xlu1 %v557_v10 }
  0x16   :  { %68 = vperm.xlu1 %522, %v599_v0  }
  0x1a   :  { %524 = vset.pattern.permute.xlu1 %v556_v9 }
  0x81   :  { %v107_v13 = vpop.permute.xlu0 %106  ;;  %v138_v17 = vpop.permute.xlu1 %137 }
  0x82   :  { %v112_v14 = vmul.f32 %v107_v13, %v615_v11  ;;  %v110_v15 = vmul.f32 %v107_v13, %v620_v12  ;;  %v111_v19 = vmul.f32 %v107_v13, %v627_v16  ;;  %v109_v24 = vmul.f32 %v107_v13, %v637_v22 }
  0x83   :  { %v141_v26 = vmul.f32 %v138_v17, %v620_v12  ;;  %v143_v31 = vmul.f32 %v138_v17, %v615_v11  ;;  %v142_v33 = vmul.f32 %v138_v17, %v627_v16  ;;  %v140_v35 = vmul.f32 %v138_v17, %v637_v22 }
  0x84   :  { %123 = vrot.lane.b32.xlu0 %v112_v14, %s558_s26  ;;  %119 = vrot.lane.b32.xlu1 %v110_v15, %s558_s26 }
  0x86   :  { %v177_v18 = vpop.permute.xlu0 %176  ;;  %v208_v21 = vpop.permute.xlu1 %207 }
  0x87   :  { %v181_v20 = vmul.f32 %v177_v18, %v627_v16  ;;  %v180_v23 = vmul.f32 %v177_v18, %v620_v12  ;;  %v182_v27 = vmul.f32 %v177_v18, %v615_v11  ;;  %v179_v30 = vmul.f32 %v177_v18, %v637_v22 }
  0x88   :  { %121 = vrot.lane.b32.xlu1 %v111_v19, %s558_s26  ;;  %v212_v32 = vmul.f32 %v208_v21, %v627_v16  ;;  %v211_v34 = vmul.f32 %v208_v21, %v620_v12  ;;  %v213_v36 = vmul.f32 %v208_v21, %v615_v11  ;;  %v210_v38 = vmul.f32 %v208_v21, %v637_v22 }
  0x89   :  { %191 = vrot.lane.b32.xlu0 %v181_v20, %s558_s26 }
  0x8b   :  { %v39_v25 = vpop.permute.xlu1 %38  ;;  %v99_v47 = vpop.permute.xlu0 %98 }
  0x8c   :  { %189 = vrot.lane.b32.xlu1 %v180_v23, %s558_s26  ;;  %v43_v37 = vmul.f32 %v39_v25, %v627_v16  ;;  %v42_v39 = vmul.f32 %v39_v25, %v620_v12  ;;  %v41_v42 = vmul.f32 %v39_v25, %v637_v22  ;;  %v44_v45 = vmul.f32 %v39_v25, %v615_v11 }
  0x8d   :  { %117 = vrot.lane.b32.xlu0 %v109_v24, %s558_s26  ;;  %v102_v61 = vmul.f32 %v99_v47, %v620_v12  ;;  %v103_v62 = vmul.f32 %v99_v47, %v627_v16  ;;  %v101_v10 = vmul.f32 %v99_v47, %v637_v22 }
  0x90   :  { %193 = vrot.lane.b32.xlu1 %v182_v27, %s558_s26  ;;  %v647_v28 = vpop.permute.xlu1 %168  ;;  %v687_v48 = vpop.permute.xlu0 %262  ;;  %v561_v27 = vmov 0.0  }
  0x91   :  { %150 = vrot.lane.b32.xlu0 %v141_v26, %s559_s0  ;;  %v652_v29 = vmul.f32 %v647_v28, %v615_v11  ;;  %v172_v9 = vmul.f32 %v647_v28, %v620_v12  ;;  %v173_v20 = vmul.f32 %v647_v28, %v627_v16  ;;  %376 = vmatprep.mubr.f32.mxu0 %v561_v27 }
  0x94   :  { %187 = vrot.lane.b32.xlu1 %v179_v30, %s558_s26  ;;  %v711_v30 = vld [vmem:[%s769_s3] sm:$0xff] }
  0x95   :  { %154 = vrot.lane.b32.xlu0 %v143_v31, %s559_s0  ;;  %v69_v40 = vpop.permute.xlu1 %68  ;;  %495 = vmatprep.mubr.msk.f32.mxu1 %vm305_vm2, %v711_v30 }
  0x96   :  { %v72_v41 = vmul.f32 %v69_v40, %v620_v12  ;;  %v71_v43 = vmul.f32 %v69_v40, %v637_v22  ;;  %v73_v44 = vmul.f32 %v69_v40, %v627_v16  ;;  %v74_v46 = vmul.f32 %v69_v40, %v615_v11 }
  0x98   :  { %152 = vrot.lane.b32.xlu1 %v142_v33, %s559_s0  ;;  %v171_v33 = vmul.f32 %v647_v28, %v637_v22 }
  0x99   :  { %222 = vrot.lane.b32.xlu0 %v212_v32, %s559_s0 }
  0x9c   :  { %220 = vrot.lane.b32.xlu1 %v211_v34, %s559_s0 }
  0x9d   :  { %148 = vrot.lane.b32.xlu0 %v140_v35, %s559_s0 }
  0xa0   :  { %224 = vrot.lane.b32.xlu1 %v213_v36, %s559_s0  ;;  %v104_v36 = vmul.f32 %v99_v47, %v615_v11 }
  0xa1   :  { %27 = vperm.xlu0 %523, %v599_v0  }
  0xa4   :  { %218 = vrot.lane.b32.xlu1 %v210_v38, %s559_s0 }
  0xa5   :  { %53 = vrot.lane.b32.xlu0 %v43_v37, %s558_s26 }
  0xa8   :  { %51 = vrot.lane.b32.xlu1 %v42_v39, %s558_s26 }
  0xa9   :  { %81 = vrot.lane.b32.xlu0 %v72_v41, %s559_s0 }
  0xac   :  { %49 = vrot.lane.b32.xlu1 %v41_v42, %s558_s26 }
  0xad   :  { %79 = vrot.lane.b32.xlu0 %v71_v43, %s559_s0 }
  0xb0   :  { %83 = vrot.lane.b32.xlu1 %v73_v44, %s559_s0 }
  0xb4   :  { %55 = vrot.lane.b32.xlu1 %v44_v45, %s558_s26 }
  0xb8   :  { %85 = vrot.lane.b32.xlu1 %v74_v46, %s559_s0 }
  0xf6   :  { %v120_v49 = vpop.permute.xlu1 %119  ;;  %v124_v50 = vpop.permute.xlu0 %123 }
  0xf7   :  { %v135_v41 = vadd.f32 %v124_v50, %v104_v36 }
  0xfa   :  { %v122_v51 = vpop.permute.xlu1 %121 }
  0xfb   :  { %v192_v52 = vpop.permute.xlu0 %191  ;;  %v126_v58 = vsel %vm57_vm0, %v120_v49, %v122_v51  ;;  %v127_v59 = vsel %vm57_vm0, %v122_v51, %v124_v50  ;;  %v294_v50 = vld [vmem:[%s770_s4 + $0x8] sm:$0xff]  ;;  %v293_v51 = vld [vmem:[%s770_s4] sm:$0xff] }
  0xfc   :  { %v133_v63 = vadd.f32 %v126_v58, %v102_v61  ;;  %v134_v0 = vadd.f32 %v127_v59, %v103_v62 }
  0xfe   :  { %v190_v53 = vpop.permute.xlu1 %189 }
  0xff   :  { %v118_v54 = vpop.permute.xlu0 %117  ;;  %v196_v5 = vsel %vm57_vm0, %v190_v53, %v192_v52 }
 0x100   :  { %v125_v6 = vsel %vm57_vm0, %v118_v54, %v120_v49  ;;  %v203_v14 = vadd.f32 %v196_v5, %v172_v9 }
 0x101   :  { %v132_v15 = vadd.f32 %v125_v6, %v101_v10 }
 0x102   :  { %v194_v55 = vpop.permute.xlu1 %193 }
 0x103   :  { %v151_v56 = vpop.permute.xlu0 %150  ;;  %v197_v17 = vsel %vm57_vm0, %v192_v52, %v194_v55  ;;  %v205_v42 = vadd.f32 %v194_v55, %v652_v29 }
 0x104   :  { %v204_v25 = vadd.f32 %v197_v17, %v173_v20 }
 0x106   :  { %v188_v57 = vpop.permute.xlu1 %187 }
 0x107   :  { %v155_v60 = vpop.permute.xlu0 %154  ;;  %v195_v31 = vsel %vm57_vm0, %v188_v57, %v190_v53 }
 0x108   :  { %v202_v37 = vadd.f32 %v195_v31, %v171_v33  ;;  %v166_v44 = vadd.f32 %v155_v60, %v135_v41 }
 0x10a   :  { %v153_v1 = vpop.permute.xlu1 %152 }
 0x10b   :  { %v157_v2 = vsel %vm87_vm1, %v151_v56, %v153_v1  ;;  %v158_v3 = vsel %vm87_vm1, %v153_v1, %v155_v60  ;;  %v223_v4 = vpop.permute.xlu0 %222 }
 0x10c   :  { %v164_v7 = vadd.f32 %v157_v2, %v133_v63  ;;  %v165_v8 = vadd.f32 %v158_v3, %v134_v0 }
 0x10e   :  { %v221_v13 = vpop.permute.xlu1 %220  ;;  %243 = vrot.lane.b32.xlu0 %v164_v7, %s560_s29  ;;  %245 = vrot.lane.b32.xlu1 %v165_v8, %s560_s29 }
 0x10f   :  { %v227_v18 = vsel %vm87_vm1, %v221_v13, %v223_v4  ;;  %v149_v19 = vpop.permute.xlu0 %148 }
 0x110   :  { %v156_v21 = vsel %vm87_vm1, %v149_v19, %v151_v56  ;;  %v234_v23 = vadd.f32 %v227_v18, %v203_v14 }
 0x111   :  { %v163_v24 = vadd.f32 %v156_v21, %v132_v15 }
 0x112   :  { %v225_v26 = vpop.permute.xlu1 %224  ;;  %v266_v35 = vadd.f32 %v687_v48, %v234_v23 }
 0x113   :  { %v228_v32 = vsel %vm87_vm1, %v223_v4, %v225_v26  ;;  %241 = vrot.lane.b32.xlu0 %v163_v24, %s560_s29  ;;  %v236_v28 = vadd.f32 %v225_v26, %v205_v42 }
 0x114   :  { %v235_v34 = vadd.f32 %v228_v32, %v204_v25  ;;  %v292_v32 = vld [vmem:[%s769_s3 + $0x8] sm:$0xff]  ;;  %s525_s3 = scalar_lea.vmem %s476_s14, 768 }
 0x115   :  { %v268_v11 = vadd.f32 %v687_v48, %v236_v28  ;;  %p526_p0 = scmp.ne.s32.totalorder %s476_s14, %s525_s3  ;;  %p531_p2 = scmp.lt.s32.totalorder %s525_s3, %s525_s3 }
 0x116   :  { %v219_v38 = vpop.permute.xlu1 %218  ;;  %v267_v39 = vadd.f32 %v687_v48, %v235_v34 }
 0x117   :  { %v226_v40 = vsel %vm87_vm1, %v219_v38, %v221_v13  ;;  %275 = vrot.lane.b32.xlu0 %v266_v35, %s562_s7  ;;  %p532_p3 = por %p531_p2, %p530_p1 }
 0x118   :  { %v233_v43 = vadd.f32 %v226_v40, %v202_v37  ;;  %277 = vrot.lane.b32.xlu1 %v267_v39, %s562_s7 }
 0x119   :  { %p533_p4 = pnand %p532_p3, %p526_p0 }
 0x11a   :  { %v52_v45 = vpop.permute.xlu1 %51  ;;  %v265_v46 = vadd.f32 %v687_v48, %v233_v43 }
 0x11c   :  { %247 = vrot.lane.b32.xlu1 %v166_v44, %s560_s29  ;;  %273 = vrot.lane.b32.xlu0 %v265_v46, %s562_s7 }
 0x11e   :  { %v50_v47 = vpop.permute.xlu1 %49 }
 0x11f   :  { %v58_v60 = vsel %vm57_vm0, %v50_v47, %v52_v45 }
 0x120   :  { %279 = vrot.lane.b32.xlu0 %v268_v11, %s562_s7  ;;  %v28_v49 = vpop.permute.xlu0 %27  ;;  %297 = vperm.xlu1 %524, %v293_v51  }
 0x121   :  { %v31_v54 = vmul.f32 %v620_v12, %v28_v49  ;;  %v30_v56 = vmul.f32 %v637_v22, %v28_v49  ;;  %v32_v57 = vmul.f32 %v627_v16, %v28_v49 }
 0x122   :  { %v84_v29 = vpop.permute.xlu1 %83 }
 0x123   :  { %v64_v12 = vadd.f32 %v58_v60, %v30_v56 }
 0x124   :  { %302 = vperm.xlu0 %523, %v294_v50   ;;  %v54_v52 = vpop.permute.xlu0 %53 }
 0x125   :  { %v59_v53 = vsel %vm57_vm0, %v52_v45, %v54_v52 }
 0x126   :  { %v56_v48 = vpop.permute.xlu1 %55  ;;  %v65_v58 = vadd.f32 %v59_v53, %v31_v54 }
 0x127   :  { %v60_v55 = vsel %vm57_vm0, %v54_v52, %v56_v48 }
 0x128   :  { %v82_v59 = vpop.permute.xlu0 %81  ;;  %v66_v62 = vadd.f32 %v60_v55, %v32_v57 }
 0x129   :  { %v89_v61 = vsel %vm87_vm1, %v82_v59, %v84_v29 }
 0x12a   :  { %v95_v63 = vadd.f32 %v89_v61, %v65_v58  ;;  %v86_v0 = vpop.permute.xlu1 %85 }
 0x12b   :  { %v90_v1 = vsel %vm87_vm1, %v84_v29, %v86_v0 }
 0x12c   :  { %v96_v2 = vadd.f32 %v90_v1, %v66_v62  ;;  %v80_v3 = vpop.permute.xlu0 %79 }
 0x12d   :  { %v88_v4 = vsel %vm87_vm1, %v80_v3, %v82_v59 }
 0x12e   :  { %v94_v5 = vadd.f32 %v88_v4, %v64_v12 }
 0x180   :  { %v244_v22 = vpop.permute.xlu0 %243  ;;  %v246_v6 = vpop.permute.xlu1 %245 }
 0x181   :  { %v251_v7 = vsel %vm249_vm3, %v244_v22, %v246_v6 }
 0x182   :  { %v257_v10 = vadd.f32 %v251_v7, %v95_v63 }
 0x185   :  { %v242_v16 = vpop.permute.xlu0 %241 }
 0x186   :  { %v250_v13 = vsel %vm249_vm3, %v242_v16, %v244_v22 }
 0x187   :  { %v256_v17 = vadd.f32 %v250_v13, %v94_v5 }
 0x189   :  { %v276_v8 = vpop.permute.xlu0 %275 }
 0x18a   :  { %v278_v9 = vpop.permute.xlu1 %277 }
 0x18b   :  { %v283_v14 = vsel %vm281_vm4, %v276_v8, %v278_v9 }
 0x18c   :  { %v289_v15 = vadd.f32 %v283_v14, %v257_v10 }
 0x18e   :  { %v248_v18 = vpop.permute.xlu1 %247  ;;  %312 = vmatprep.subr.mxu0 %v289_v15  ;;  %v274_v19 = vpop.permute.xlu0 %273 }
 0x18f   :  { %v252_v20 = vsel %vm249_vm3, %v246_v6, %v248_v18  ;;  %v282_v21 = vsel %vm281_vm4, %v274_v19, %v276_v8 }
 0x190   :  { %v288_v23 = vadd.f32 %v282_v21, %v256_v17  ;;  %v258_v24 = vadd.f32 %v252_v20, %v96_v2 }
 0x192   :  { %313 = vmatpush1.msra.mxu0 %v288_v23  ;;  %v280_v25 = vpop.permute.xlu0 %279 }
 0x193   :  { %v284_v26 = vsel %vm281_vm4, %v278_v9, %v280_v25  ;;  %486 = vmatmul.mubr.msk.f32.vlgmr.msra.gmra.mrb[0].mxu0 %vm305_vm2, %v711_v30 }
 0x194   :  { %382 = vmatprep.mubr.f32.mxu0 %v561_v27  ;;  %v290_v31 = vadd.f32 %v284_v26, %v258_v24 }
 0x196   :  { %493 = vmatprep.subr.mxu1 %v290_v31 }
 0x197   :  { %487 = vmatmul.mubr.msk.f32.gmra.mrb[2].mxu0 %vm305_vm2, %v292_v32  ;;  %494 = vmatpush3.msra.mxu1 %v290_v31 }
 0x198   :  { %496 = vmatmul.mubr.msk.f32.vlgmr.msra.gmra.mrb[0].mxu1 %vm305_vm2, %v292_v32 }
 0x19f   :  { %v298_v33 = vpop.permute.xlu1 %297 }
 0x1a3   :  { %v303_v27 = vpop.permute.xlu0 %302 }
 0x266   :  { %v378_v34 = vpop.f32.mrb[0].mxu0 }
 0x267   :  { %v379_v35 = vadd.f32 %v378_v34, %v298_v33  ;;  %v380_v36 = vpop.f32.mrb[1].mxu0 }
 0x268   :  { %v381_v37 = vadd.f32 %v380_v36, %v298_v33 }
 0x269   :  { %464 = vst [vmem:[#allocation2] sm:$0xff] %v379_v35 }
 0x26a   :  { %465 = vst [vmem:[#allocation2 + $0x8] sm:$0xff] %v381_v37  ;;  %v384_v30 = vpop.f32.mrb[2].mxu0 }
 0x26b   :  { %v385_v38 = vadd.f32 %v384_v30, %v303_v27  ;;  %v386_v39 = vpop.f32.mrb[3].mxu0  ;;  %v497_v40 = vpop.f32.mrb[0].mxu1 }
 0x26c   :  { %v387_v41 = vadd.f32 %v386_v39, %v303_v27  ;;  %v461_v42 = vadd.f32 %v497_v40, %v303_v27  ;;  %v455_v43 = vpop.f32.mrb[1].mxu1 }
 0x26d   :  { %467 = vst [vmem:[#allocation2 + $0x18] sm:$0xff] %v385_v38  ;;  %v456_v44 = vadd.f32 %v455_v43, %v298_v33 }
 0x26e   :  { %468 = vst [vmem:[#allocation2 + $0x20] sm:$0xff] %v387_v41  ;;  %469 = vst [vmem:[#allocation2 + $0x28] sm:$0xff] %v461_v42 }
 0x26f   :  { %466 = vst [vmem:[#allocation2 + $0x10] sm:$0xff] %v456_v44 }
 0x270   :  { %536 = shalt.err (!%p533_p4)
}
 0x271   :  { %s537_s17 = scalar_lea.hbm %s771_s5, 768 }
 0x272   :  { %p538_p5 = scmp.ne.s32.totalorder %s771_s5, %s537_s17  ;;  %p541_p6 = scmp.lt.u32.totalorder %s537_s17, %s771_s5 }
 0x274   :  { %p543_p7 = pnand %p541_p6, %p538_p5 }
 0x276   :  { %546 = shalt.err (!%p543_p7)
}
 0x277   :  { %s564_s21 = smov 384   ;;  %s565_s22 = smov 24  }
 0x278   :  { %481 = dma.vmem_to_hbm [thread:$0]  %s476_s14, 768, %s771_s5, [#allocation3], %s564_s21, %s564_s21, %s565_s22  }
 0x279   :  { %547 = dma.done.wait [#allocation3], 768  }
 0x27a   :  { %548 = vsyncadd [#allocation3], 4294966528 }
 0x27b   :  { %485 = vsyncpa [#allocation3], 1 }

</bundles_post_ra>
